<compile_context>
chip_gen: v7x
topology: tpu7x:2x2x1
jax: 0.10.0
libtpu: 0.0.40
codegen_flags: <defaults>
</compile_context>

<pallas_src>
import functools

import numpy as np
import jax
import jax.numpy as jnp
from jax.experimental import pallas as pl
from jax.experimental.pallas import tpu as pltpu


# ----------------------------- kernel --------------------------------------- #

def feature_embedder_kernel(x_ref, w_ref, b_ref, o_ref, *, scale):
    """out = (x @ W + b) * sqrt(d_model), fully VMEM-resident per row tile."""
    x = x_ref[...]                                          # (tm, d_feat)
    y = jnp.dot(x, w_ref[...], preferred_element_type=jnp.float32)
    o_ref[...] = ((y + b_ref[...]) * scale).astype(o_ref.dtype)


# ----------------------------- wrapper --------------------------------------- #

def feature_embedder(x, w, b, *, block_rows=512):
    """x: (..., d_feat) f32; w: (d_feat, d_model); b: (1, d_model)."""
    d_feat = x.shape[-1]
    d_model = w.shape[-1]
    lead = x.shape[:-1]
    m = int(np.prod(lead)) if lead else 1
    x2 = x.reshape(m, d_feat)

    # Single row-tile grid axis.  Small inputs -> one grid step (whole problem
    # in VMEM).  Large inputs -> pipelined row tiles of `block_rows`, padded so
    # the tile evenly divides the (padded) row count.
    if m <= block_rows:
        tm = m
        m_pad = m
    else:
        tm = block_rows
        m_pad = ((m + tm - 1) // tm) * tm
        if m_pad != m:
            x2 = jnp.pad(x2, ((0, m_pad - m), (0, 0)))
    grid = (m_pad // tm,)

    scale = float(np.sqrt(d_model))
    out = pl.pallas_call(
        functools.partial(feature_embedder_kernel, scale=scale),
        grid=grid,
        in_specs=[
            pl.BlockSpec((tm, d_feat), lambda i: (i, 0)),        # row tile
            pl.BlockSpec((d_feat, d_model), lambda i: (0, 0)),   # full weight
            pl.BlockSpec((1, d_model), lambda i: (0, 0)),        # full bias
        ],
        out_specs=pl.BlockSpec((tm, d_model), lambda i: (i, 0)),
        out_shape=jax.ShapeDtypeStruct((m_pad, d_model), jnp.float32),
        compiler_params=pltpu.CompilerParams(
            dimension_semantics=("parallel",)),
    )(x2, w, b)

    if m_pad != m:
        out = out[:m]
    return out.reshape(*lead, d_model)


# ------------------------------ main ----------------------------------------- #

if __name__ == "__main__":
    B, S = 2, 16
    D_FEAT, D_MODEL = 32, 128        # d_model multiple of 128 -> lane-dense stores

    key = jax.random.PRNGKey(0)
    kx, kw, kb = jax.random.split(key, 3)
    x = jax.random.normal(kx, (B, S, D_FEAT), jnp.float32)
    w = 0.05 * jax.random.normal(kw, (D_FEAT, D_MODEL), jnp.float32)
    b = 0.05 * jax.random.normal(kb, (1, D_MODEL), jnp.float32)

    out = feature_embedder(x, w, b)
    out = jax.block_until_ready(out)

    # Pure-JAX reference: Linear then * sqrt(d_model), matching the PyTorch module.
    ref = (x @ w + b) * np.sqrt(D_MODEL)
    np.testing.assert_allclose(np.asarray(out), np.asarray(ref),
                               rtol=1e-5, atol=1e-5)
    assert out.shape == (B, S, D_MODEL)
    print("KERNEL_OK")
</pallas_src>

<mosaic_0001>
module attributes {stable_mosaic.version = 11 : i64} {
  func.func @feature_embedder_kernel(%arg0: i32, %arg1: memref<32x32xf32, #tpu.memory_space<vmem>>, %arg2: memref<32x128xf32, #tpu.memory_space<vmem>>, %arg3: memref<1x128xf32, #tpu.memory_space<vmem>>, %arg4: memref<32x128xf32, #tpu.memory_space<vmem>>) attributes {dimension_semantics = [#tpu.dimension_semantics<parallel>], iteration_bounds = array<i64: 1>, scalar_prefetch = 0 : i64, scratch_operands = 0 : i64, tpu.core_type = #tpu.core_type<tc>, window_params = [{transform_indices = @transform_0, window_bounds = array<i64: 32, 32>}, {pipeline_mode = #tpu.pipeline_mode<synchronous>, transform_indices = @transform_1, window_bounds = array<i64: 32, 128>}, {pipeline_mode = #tpu.pipeline_mode<synchronous>, transform_indices = @transform_2, window_bounds = array<i64: 1, 128>}, {transform_indices = @transform_3, window_bounds = array<i64: 32, 128>}]} {
    %c0 = arith.constant 0 : index
    %c0_0 = arith.constant 0 : index
    %0 = vector.load %arg1[%c0, %c0_0] : memref<32x32xf32, #tpu.memory_space<vmem>>, vector<32x32xf32>
    %c0_1 = arith.constant 0 : index
    %c0_2 = arith.constant 0 : index
    %1 = vector.load %arg2[%c0_1, %c0_2] : memref<32x128xf32, #tpu.memory_space<vmem>>, vector<32x128xf32>
    %cst = arith.constant dense<0.000000e+00> : vector<32x128xf32>
    %2 = tpu.matmul %0, %1, %cst {dimension_numbers = #tpu.dot_dimension_numbers<[1], [0], [0], [1], [0, 0, 1, 1], [], []>} : vector<32x32xf32>, vector<32x128xf32>, vector<32x128xf32> -> vector<32x128xf32>
    %c0_3 = arith.constant 0 : index
    %c0_4 = arith.constant 0 : index
    %3 = vector.load %arg3[%c0_3, %c0_4] : memref<1x128xf32, #tpu.memory_space<vmem>>, vector<1x128xf32>
    %4 = vector.broadcast %3 : vector<1x128xf32> to vector<32x128xf32>
    %5 = arith.addf %2, %4 : vector<32x128xf32>
    %cst_5 = arith.constant 11.3137083 : f32
    %6 = vector.broadcast %cst_5 : f32 to vector<32x128xf32>
    %7 = arith.mulf %5, %6 : vector<32x128xf32>
    %c0_6 = arith.constant 0 : index
    %c0_7 = arith.constant 0 : index
    %8 = vector.load %arg4[%c0_6, %c0_7] : memref<32x128xf32, #tpu.memory_space<vmem>>, vector<32x128xf32>
    tpu.vector_store %arg4[%c0_6, %c0_7], %7 {strides = array<i32>} : memref<32x128xf32, #tpu.memory_space<vmem>>, vector<32x128xf32>,
    return
  }
  func.func @transform_0(%arg0: i32) -> (i32, i32) {
    %c0_i32 = arith.constant 0 : i32
    %c0_i32_0 = arith.constant 0 : i32
    return %arg0, %c0_i32 : i32, i32
  }
  func.func @transform_1(%arg0: i32) -> (i32, i32) {
    %c0_i32 = arith.constant 0 : i32
    %c0_i32_0 = arith.constant 0 : i32
    %c0_i32_1 = arith.constant 0 : i32
    return %c0_i32, %c0_i32_0 : i32, i32
  }
  func.func @transform_2(%arg0: i32) -> (i32, i32) {
    %c0_i32 = arith.constant 0 : i32
    %c0_i32_0 = arith.constant 0 : i32
    %c0_i32_1 = arith.constant 0 : i32
    return %c0_i32, %c0_i32_0 : i32, i32
  }
  func.func @transform_3(%arg0: i32) -> (i32, i32) {
    %c0_i32 = arith.constant 0 : i32
    %c0_i32_0 = arith.constant 0 : i32
    return %arg0, %c0_i32 : i32, i32
  }
}

</mosaic_0001>

<bundles_post_ra>
// kernel: tpu_custom_call.1
= control target key start
LH: loop header
LB: loop body
LE: loop exit
PB: predicated region body
PF: predicated region fallthrough
CT: control target
= control target key end

     0   :  { %8 = vsyncpa [#allocation3], 0  ;;  %s375_s0 = inlined_call_operand.hbm [shape: f32[32,32], index: 0, kind: input, shape index: {}]   ;;  %s376_s1 = inlined_call_operand.hbm [shape: f32[32,128], index: 1, kind: input, shape index: {}]   ;;  %s377_s2 = inlined_call_operand.vmem [shape: f32[1,128], index: 2, kind: input, shape index: {}]   ;;  %s378_s3 = inlined_call_operand.hbm [shape: f32[32,128], index: 3, kind: output, shape index: {}]  }
   0x1   :  { %9 = vsyncpa [#allocation6], 0 }
   0x2   :  { %10 = vsyncpa [#allocation4], 0  ;;  %s298_s12 = smov [#allocation2]   ;;  %s226_s16 = scalar_lea.hbm %s375_s0, 512 }
   0x3   :  { %s16_s13 = sshll.u32 %s298_s12, 4  ;;  %p227_p0 = scmp.ne.s32.totalorder %s375_s0, %s226_s16  ;;  %s17_s13 = int_to_ptr.vmem [resolvable:$true] %s16_s13 }
   0x4   :  { %p230_p1 = scmp.lt.u32.totalorder %s226_s16, %s375_s0 }
   0x6   :  { %p232_p2 = pnand %p230_p1, %p227_p0 }
   0x8   :  { %235 = shalt.err (!%p232_p2)
}
   0x9   :  { %s236_s21 = scalar_lea.vmem %s17_s13, 512  ;;  %p241_p4 = scmp.lt.s32.totalorder %s17_s13, %s17_s13 }
   0xa   :  { %p237_p3 = scmp.ne.s32.totalorder %s17_s13, %s236_s21  ;;  %p242_p5 = scmp.lt.s32.totalorder %s236_s21, %s236_s21 }
   0xc   :  { %p243_p6 = por %p242_p5, %p241_p4 }
   0xe   :  { %p244_p7 = pnand %p243_p6, %p237_p3 }
  0x10   :  { %247 = shalt.err (!%p244_p7)
}
  0x11   :  { %s299_s22 = smov 128   ;;  %s300_s23 = smov 8  }
  0x12   :  { %22 = dma.hbm_to_vmem [thread:$0]  %s375_s0, 512, %s17_s13, [#allocation3], %s299_s22, %s299_s22, %s300_s23  }
  0x13   :  { %s301_s26 = smov [#allocation5]   ;;  %s248_s30 = scalar_lea.hbm %s376_s1, 512 }
  0x14   :  { %s28_s27 = sshll.u32 %s301_s26, 4  ;;  %p249_p8 = scmp.ne.s32.totalorder %s376_s1, %s248_s30  ;;  %s29_s27 = int_to_ptr.vmem [resolvable:$true] %s28_s27 }
  0x15   :  { %p252_p9 = scmp.lt.u32.totalorder %s248_s30, %s376_s1 }
  0x17   :  { %p254_p10 = pnand %p252_p9, %p249_p8 }
  0x19   :  { %257 = shalt.err (!%p254_p10)
}
  0x1a   :  { %s258_s8 = scalar_lea.vmem %s29_s27, 512  ;;  %p263_p12 = scmp.lt.s32.totalorder %s29_s27, %s29_s27 }
  0x1b   :  { %p259_p11 = scmp.ne.s32.totalorder %s29_s27, %s258_s8  ;;  %p264_p13 = scmp.lt.s32.totalorder %s258_s8, %s258_s8 }
  0x1d   :  { %p265_p0 = por %p264_p13, %p263_p12 }
  0x1f   :  { %p266_p1 = pnand %p265_p0, %p259_p11 }
  0x21   :  { %269 = shalt.err (!%p266_p1)
}
  0x22   :  { %34 = dma.hbm_to_vmem [thread:$0]  %s376_s1, 512, %s29_s27, [#allocation6], %s299_s22, %s299_s22, %s300_s23  }
  0x23   :  { %292 = dma.done.wait [#allocation3], 512  }
  0x24   :  { %293 = vsyncadd [#allocation3], 4294966784 }
  0x25   :  { %294 = dma.done.wait [#allocation6], 512  }
  0x26   :  { %295 = vsyncadd [#allocation6], 4294966784  ;;  %vm58_vm0 = vcmask 261120   ;;  %v47_v0 = vld [vmem:[#allocation5] sm:$0xff]  ;;  %v48_v1 = vld [vmem:[#allocation5 + $0x8] sm:$0xff]  ;;  %s302_s11 = smov [#allocation7]  }
  0x27   :  { %v49_v2 = vld [vmem:[#allocation5 + $0x10] sm:$0xff]  ;;  %v209_v3 = vpack.c.bf16 %v48_v1, %v47_v0  ;;  %v50_v4 = vld [vmem:[#allocation5 + $0x18] sm:$0xff]  ;;  %v43_v5 = vld [vmem:[#allocation2] sm:$0xff]  ;;  %s169_s12 = sshll.u32 %s302_s11, 4  ;;  %s170_s12 = int_to_ptr.vmem [resolvable:$true] %s169_s12 }
  0x28   :  { %v45_v6 = vld [vmem:[#allocation2 + $0x10] sm:$0xff]  ;;  %v213_v7 = vpack.c.bf16 %v50_v4, %v49_v2  ;;  %203 = vmatprep.mubr.msk.f32.mxu0 %vm58_vm0, %v43_v5  ;;  %v44_v8 = vld [vmem:[#allocation2 + $0x8] sm:$0xff]  ;;  %v46_v9 = vld [vmem:[#allocation2 + $0x18] sm:$0xff]  ;;  %p275_p3 = scmp.lt.s32.totalorder %s170_s12, %s170_s12 }
  0x29   :  { %206 = vmatprep.mubr.msk.f32.mxu1 %vm58_vm0, %v45_v6  ;;  %210 = vmatprep.subr.bf16.mxu0 %v209_v3  ;;  %v182_v10 = vld [vmem:[%s377_s2] ss:$0 sm:$0xff]  ;;  %s270_s2 = scalar_lea.vmem %s170_s12, 512 }
  0x2a   :  { %217 = vmatprep.subr.bf16.mxu1 %v209_v3  ;;  %212 = vmatpush3.bf16.msra.mxu0 %v209_v3  ;;  %p271_p2 = scmp.ne.s32.totalorder %s170_s12, %s270_s2  ;;  %p276_p4 = scmp.lt.s32.totalorder %s270_s2, %s270_s2 }
  0x2b   :  { %219 = vmatpush3.bf16.msra.mxu1 %v209_v3  ;;  %214 = vmatprep.subr.bf16.mxu0 %v213_v7 }
  0x2c   :  { %218 = vmatprep.subr.bf16.mxu1 %v213_v7  ;;  %p277_p5 = por %p276_p4, %p275_p3 }
  0x2e   :  { %216 = vmatpush3.bf16.msra.mxu0 %v213_v7  ;;  %p278_p6 = pnand %p277_p5, %p271_p2 }
  0x2f   :  { %220 = vmatpush3.bf16.msra.mxu1 %v213_v7 }
  0x31   :  { %204 = vmatmul.mubr.msk.f32.vlgmr.msra.gmra.mrb[0].mxu0 %vm58_vm0, %v44_v8 }
  0x32   :  { %207 = vmatmul.mubr.msk.f32.vlgmr.msra.gmra.mrb[0].mxu1 %vm58_vm0, %v46_v9 }
 0x104   :  { %v205_v11 = vpop.f32.mrb[0].mxu0 }
 0x105   :  { %v208_v12 = vpop.f32.mrb[0].mxu1  ;;  %v143_v13 = vadd.f32 %v205_v11, %v182_v10  ;;  %v137_v15 = vpop.f32.mrb[1].mxu0 }
 0x106   :  { %v153_v14 = vadd.f32 %v208_v12, %v182_v10  ;;  %v147_v16 = vpop.f32.mrb[1].mxu1  ;;  %v138_v17 = vadd.f32 %v182_v10, %v137_v15 }
 0x107   :  { %v148_v18 = vadd.f32 %v182_v10, %v147_v16  ;;  %v157_v19 = vmul.f32 11.313708, %v143_v13 }
 0x108   :  { %v159_v20 = vmul.f32 11.313708, %v153_v14  ;;  %v156_v21 = vmul.f32 11.313708, %v138_v17 }
 0x109   :  { %v158_v22 = vmul.f32 11.313708, %v148_v18  ;;  %161 = vst [vmem:[#allocation7 + $0x8] sm:$0xff] %v157_v19 }
 0x10a   :  { %163 = vst [vmem:[#allocation7 + $0x18] sm:$0xff] %v159_v20  ;;  %160 = vst [vmem:[#allocation7] sm:$0xff] %v156_v21 }
 0x10b   :  { %162 = vst [vmem:[#allocation7 + $0x10] sm:$0xff] %v158_v22 }
 0x10c   :  { %281 = shalt.err (!%p278_p6)
}
 0x10d   :  { %s282_s15 = scalar_lea.hbm %s378_s3, 512 }
 0x10e   :  { %p283_p7 = scmp.ne.s32.totalorder %s378_s3, %s282_s15  ;;  %p286_p8 = scmp.lt.u32.totalorder %s282_s15, %s378_s3 }
 0x110   :  { %p288_p9 = pnand %p286_p8, %p283_p7 }
 0x112   :  { %291 = shalt.err (!%p288_p9)
}
 0x113   :  { %175 = dma.vmem_to_hbm [thread:$0]  %s170_s12, 512, %s378_s3, [#allocation4], %s299_s22, %s299_s22, %s300_s23  }
 0x114   :  { %296 = dma.done.wait [#allocation4], 512  }
 0x115   :  { %297 = vsyncadd [#allocation4], 4294966784 }
 0x116   :  { %179 = vsyncpa [#allocation3], 1 }
 0x117   :  { %180 = vsyncpa [#allocation6], 1 }
 0x118   :  { %181 = vsyncpa [#allocation4], 1 }

</bundles_post_ra>
